<compile_context>
chip_gen: v5e
topology: v5e:2x2
jax: 0.10.0
libtpu: 0.0.40
codegen_flags: <defaults>
</compile_context>

<pallas_src>
import functools

import jax
import jax.numpy as jnp
from jax.experimental import pallas as pl
from jax.experimental.pallas import tpu as pltpu


def _round_up(n, m):
    return ((n + m - 1) // m) * m


def _threshold_kernel(x_ref, params_ref, scal_ref, o_ref, *, d_orig):
    # x_ref:      (TR, D_pad)  input rows (possibly zero-padded cols/rows)
    # params_ref: (3,  D_pad)  row 0 = gamma, row 1 = beta, row 2 = threshold
    #                          (padded lanes are zero)
    # scal_ref:   (2,) SMEM    [alpha, 1 - alpha]
    x = x_ref[...].astype(jnp.float32)

    gamma = params_ref[0:1, :]
    beta = params_ref[1:2, :]
    thr = params_ref[2:3, :]

    # LayerNorm over the true feature dim (padded columns are zero, so sums are
    # unaffected; divide by the real D). Single-pass variance, biased, eps=1e-5.
    inv_d = 1.0 / d_orig
    s1 = jnp.sum(x, axis=-1, keepdims=True)
    s2 = jnp.sum(x * x, axis=-1, keepdims=True)
    mean = s1 * inv_d
    var = jnp.maximum(s2 * inv_d - mean * mean, 0.0)
    inv = jax.lax.rsqrt(var + 1e-5)
    x_norm = (x - mean) * inv * gamma + beta

    # gate = sigmoid(|x_norm| - threshold), via the exact tanh identity (EUP).
    z = jnp.abs(x_norm) - thr
    gate = 0.5 * jnp.tanh(0.5 * z) + 0.5

    alpha = scal_ref[0]
    one_m_alpha = scal_ref[1]
    # alpha*(gate*x) + (1-alpha)*x  ==  x * ((1-alpha) + alpha*gate)
    y = x * (one_m_alpha + alpha * gate)
    o_ref[...] = jnp.clip(y, -100.0, 100.0).astype(o_ref.dtype)


def _choose_tile_rows(R, D_pad, itemsize):
    # Budget ~24 MiB of VMEM working set: double-buffered in + out blocks plus
    # f32 intermediates ~= (4*itemsize + 8) bytes per element.
    budget = 24 * 1024 * 1024
    bytes_per_row = (4 * itemsize + 8) * D_pad
    t = budget // max(bytes_per_row, 1)
    t = int(max(8, min(t, 1024)))
    # Keep at least ~8 grid steps when the problem is small (megacore/pipeline).
    t = min(t, max(8, _round_up(pl.cdiv(R, 8), 8)))
    return max((t // 8) * 8, 8)


def improved_emergent_threshold(x, gamma, beta, running_var, adaptive_threshold,
                                *, tile_rows=None,
                                vmem_limit_bytes=48 * 1024 * 1024):
    """x: (B, S, D). Returns (B, S, D) in x.dtype. Eval-mode forward (running
    stats are NOT updated; matches module behaviour with training=False)."""
    B, S, D = x.shape
    R = B * S
    D_pad = max(128, _round_up(D, 128))

    if tile_rows is None:
        tile_rows = _choose_tile_rows(R, D_pad, jnp.dtype(x.dtype).itemsize)
    R_pad = _round_up(R, tile_rows)

    # Scalar / vector prep in plain JAX (f32).
    alpha = jax.nn.sigmoid(adaptive_threshold.astype(jnp.float32)).reshape(())
    scalars = jnp.stack([alpha, 1.0 - alpha]).astype(jnp.float32)  # (2,) -> SMEM

    thr = alpha * jnp.sqrt(jnp.maximum(running_var.astype(jnp.float32), 1e-6))
    params = jnp.zeros((3, D_pad), jnp.float32)
    params = params.at[0, :D].set(gamma.astype(jnp.float32))
    params = params.at[1, :D].set(beta.astype(jnp.float32))
    params = params.at[2, :D].set(thr)

    x2 = x.reshape(R, D)
    if R_pad != R or D_pad != D:
        x2 = jnp.pad(x2, ((0, R_pad - R), (0, D_pad - D)))

    kernel = functools.partial(_threshold_kernel, d_orig=float(D))

    out = pl.pallas_call(
        kernel,
        out_shape=jax.ShapeDtypeStruct((R_pad, D_pad), x.dtype),
        grid_spec=pltpu.PrefetchScalarGridSpec(
            num_scalar_prefetch=0,
            grid=(R_pad // tile_rows,),
            in_specs=[
                pl.BlockSpec((tile_rows, D_pad), lambda i: (i, 0)),     # x rows
                pl.BlockSpec((3, D_pad), lambda i: (0, 0)),             # gamma/beta/thr
                pl.BlockSpec(memory_space=pltpu.MemorySpace.SMEM),      # [alpha, 1-alpha]
            ],
            out_specs=pl.BlockSpec((tile_rows, D_pad), lambda i: (i, 0)),
        ),
        compiler_params=pltpu.CompilerParams(
            dimension_semantics=("parallel",),
            vmem_limit_bytes=vmem_limit_bytes),
    )(x2, params, scalars)

    return out[:R, :D].reshape(B, S, D)


def _reference(x, gamma, beta, running_var, adaptive_threshold):
    # Pure-JAX reference mirroring the PyTorch forward (eval mode), in f32.
    xf = x.astype(jnp.float32)
    mean = jnp.mean(xf, axis=-1, keepdims=True)
    var = jnp.mean((xf - mean) ** 2, axis=-1, keepdims=True)
    x_norm = (xf - mean) / jnp.sqrt(var + 1e-5) * gamma + beta
    threshold = jax.nn.sigmoid(adaptive_threshold) * jnp.sqrt(
        jnp.maximum(running_var, 1e-6))
    gate = jax.nn.sigmoid(jnp.abs(x_norm) - threshold.reshape(1, 1, -1))
    alpha = jax.nn.sigmoid(adaptive_threshold)
    y = jnp.clip(alpha * (gate * xf) + (1.0 - alpha) * xf, -100.0, 100.0)
    return y.astype(x.dtype)


if __name__ == "__main__":
    key = jax.random.PRNGKey(0)

    # --- primary small test shape (matches the module: (B, S, feature_dim)) ---
    B, S, D = 2, 8, 32
    kx, kg, kb, kv = jax.random.split(key, 4)
    x = jax.random.normal(kx, (B, S, D), dtype=jnp.float32)

    # Deterministic parameter init (shapes per module __init__):
    #   LayerNorm(feature_dim): weight (D,), bias (D,)
    #   running_var buffer (D,) -> ones (fresh module); adaptive_threshold (1,) -> 0.5
    gamma = jnp.ones((D,), jnp.float32) + 0.1 * jax.random.normal(kg, (D,), jnp.float32)
    beta = 0.1 * jax.random.normal(kb, (D,), jnp.float32)
    running_var = jnp.ones((D,), jnp.float32)
    adaptive_threshold = jnp.array([0.5], jnp.float32)
    # TODO(synk): training-mode running_mean/running_var momentum update is a
    # stateful buffer update outside the forward hot path; eval-mode semantics
    # are implemented here.

    out = improved_emergent_threshold(x, gamma, beta, running_var, adaptive_threshold)
    out = jax.block_until_ready(out)
    ref = _reference(x, gamma, beta, running_var, adaptive_threshold)
    assert out.shape == (B, S, D)
    assert jnp.allclose(out, ref, atol=1e-5, rtol=1e-5), "mismatch vs reference (small D)"

    # --- second shape exercising the row-tail + D-multiple-of-128 paths ---
    B2, S2, D2 = 3, 40, 256
    k2x, k2g, k2b, k2v = jax.random.split(jax.random.PRNGKey(1), 4)
    x2 = jax.random.normal(k2x, (B2, S2, D2), dtype=jnp.float32)
    gamma2 = jnp.ones((D2,), jnp.float32) + 0.1 * jax.random.normal(k2g, (D2,), jnp.float32)
    beta2 = 0.1 * jax.random.normal(k2b, (D2,), jnp.float32)
    running_var2 = jnp.abs(1.0 + 0.2 * jax.random.normal(k2v, (D2,), jnp.float32))
    adaptive_threshold2 = jnp.array([0.5], jnp.float32)

    out2 = improved_emergent_threshold(x2, gamma2, beta2, running_var2, adaptive_threshold2)
    out2 = jax.block_until_ready(out2)
    ref2 = _reference(x2, gamma2, beta2, running_var2, adaptive_threshold2)
    assert out2.shape == (B2, S2, D2)
    assert jnp.allclose(out2, ref2, atol=1e-5, rtol=1e-5), "mismatch vs reference (tail/pad)"

    print("KERNEL_OK")
</pallas_src>

<mosaic_0001>
module attributes {stable_mosaic.version = 11 : i64} {
  func.func @_threshold_kernel(%arg0: i32, %arg1: memref<8x128xf32, #tpu.memory_space<vmem>>, %arg2: memref<3x128xf32, #tpu.memory_space<vmem>>, %arg3: memref<2xf32, #tpu.memory_space<smem>>, %arg4: memref<8x128xf32, #tpu.memory_space<vmem>>) attributes {dimension_semantics = [#tpu.dimension_semantics<parallel>], iteration_bounds = array<i64: 2>, scalar_prefetch = 0 : i64, scratch_operands = 0 : i64, tpu.core_type = #tpu.core_type<tc>, window_params = [{transform_indices = @transform_0, window_bounds = array<i64: 8, 128>}, {pipeline_mode = #tpu.pipeline_mode<synchronous>, transform_indices = @transform_1, window_bounds = array<i64: 3, 128>}, {transform_indices = @transform_2, window_bounds = array<i64: 2>}, {transform_indices = @transform_3, window_bounds = array<i64: 8, 128>}]} {
    %c0 = arith.constant 0 : index
    %c0_0 = arith.constant 0 : index
    %0 = vector.load %arg1[%c0, %c0_0] : memref<8x128xf32, #tpu.memory_space<vmem>>, vector<8x128xf32>
    %c0_1 = arith.constant 0 : index
    %c0_2 = arith.constant 0 : index
    %1 = vector.load %arg2[%c0_1, %c0_2] : memref<3x128xf32, #tpu.memory_space<vmem>>, vector<1x128xf32>
    %c1 = arith.constant 1 : index
    %c0_3 = arith.constant 0 : index
    %2 = vector.load %arg2[%c1, %c0_3] : memref<3x128xf32, #tpu.memory_space<vmem>>, vector<1x128xf32>
    %c2 = arith.constant 2 : index
    %c0_4 = arith.constant 0 : index
    %3 = vector.load %arg2[%c2, %c0_4] : memref<3x128xf32, #tpu.memory_space<vmem>>, vector<1x128xf32>
    %cst = arith.constant dense<0.000000e+00> : vector<8xf32>
    %4 = vector.multi_reduction <add>, %0, %cst [1] : vector<8x128xf32> to vector<8xf32>
    %5 = vector.shape_cast %4 : vector<8xf32> to vector<8x1xf32>
    %6 = arith.mulf %0, %0 : vector<8x128xf32>
    %cst_5 = arith.constant dense<0.000000e+00> : vector<8xf32>
    %7 = vector.multi_reduction <add>, %6, %cst_5 [1] : vector<8x128xf32> to vector<8xf32>
    %8 = vector.shape_cast %7 : vector<8xf32> to vector<8x1xf32>
    %cst_6 = arith.constant 3.125000e-02 : f32
    %9 = vector.broadcast %cst_6 : f32 to vector<8x1xf32>
    %10 = arith.mulf %5, %9 : vector<8x1xf32>
    %cst_7 = arith.constant 3.125000e-02 : f32
    %11 = vector.broadcast %cst_7 : f32 to vector<8x1xf32>
    %12 = arith.mulf %8, %11 : vector<8x1xf32>
    %13 = arith.mulf %10, %10 : vector<8x1xf32>
    %14 = arith.subf %12, %13 : vector<8x1xf32>
    %cst_8 = arith.constant 0.000000e+00 : f32
    %15 = vector.broadcast %cst_8 : f32 to vector<8x1xf32>
    %16 = arith.maximumf %14, %15 : vector<8x1xf32>
    %cst_9 = arith.constant 9.99999974E-6 : f32
    %17 = vector.broadcast %cst_9 : f32 to vector<8x1xf32>
    %18 = arith.addf %16, %17 : vector<8x1xf32>
    %19 = math.rsqrt %18 : vector<8x1xf32>
    %20 = vector.broadcast %10 : vector<8x1xf32> to vector<8x128xf32>
    %21 = arith.subf %0, %20 : vector<8x128xf32>
    %22 = vector.broadcast %19 : vector<8x1xf32> to vector<8x128xf32>
    %23 = arith.mulf %21, %22 : vector<8x128xf32>
    %24 = vector.broadcast %1 : vector<1x128xf32> to vector<8x128xf32>
    %25 = arith.mulf %23, %24 : vector<8x128xf32>
    %26 = vector.broadcast %2 : vector<1x128xf32> to vector<8x128xf32>
    %27 = arith.addf %25, %26 : vector<8x128xf32>
    %28 = math.absf %27 : vector<8x128xf32>
    %29 = vector.broadcast %3 : vector<1x128xf32> to vector<8x128xf32>
    %30 = arith.subf %28, %29 : vector<8x128xf32>
    %cst_10 = arith.constant 5.000000e-01 : f32
    %31 = vector.broadcast %cst_10 : f32 to vector<8x128xf32>
    %32 = arith.mulf %31, %30 : vector<8x128xf32>
    %33 = math.tanh %32 : vector<8x128xf32>
    %cst_11 = arith.constant 5.000000e-01 : f32
    %34 = vector.broadcast %cst_11 : f32 to vector<8x128xf32>
    %35 = arith.mulf %34, %33 : vector<8x128xf32>
    %cst_12 = arith.constant 5.000000e-01 : f32
    %36 = vector.broadcast %cst_12 : f32 to vector<8x128xf32>
    %37 = arith.addf %35, %36 : vector<8x128xf32>
    %c0_13 = arith.constant 0 : index
    %38 = memref.load %arg3[%c0_13] : memref<2xf32, #tpu.memory_space<smem>>
    %c1_14 = arith.constant 1 : index
    %39 = memref.load %arg3[%c1_14] : memref<2xf32, #tpu.memory_space<smem>>
    %40 = vector.broadcast %38 : f32 to vector<8x128xf32>
    %41 = arith.mulf %40, %37 : vector<8x128xf32>
    %42 = vector.broadcast %39 : f32 to vector<8x128xf32>
    %43 = arith.addf %42, %41 : vector<8x128xf32>
    %44 = arith.mulf %0, %43 : vector<8x128xf32>
    %cst_15 = arith.constant -1.000000e+02 : f32
    %cst_16 = arith.constant 1.000000e+02 : f32
    %45 = vector.broadcast %cst_15 : f32 to vector<8x128xf32>
    %46 = arith.maximumf %45, %44 : vector<8x128xf32>
    %47 = vector.broadcast %cst_16 : f32 to vector<8x128xf32>
    %48 = arith.minimumf %47, %46 : vector<8x128xf32>
    %c0_17 = arith.constant 0 : index
    %c0_18 = arith.constant 0 : index
    %49 = vector.load %arg4[%c0_17, %c0_18] : memref<8x128xf32, #tpu.memory_space<vmem>>, vector<8x128xf32>
    tpu.vector_store %arg4[%c0_17, %c0_18], %48 {strides = array<i32>} : memref<8x128xf32, #tpu.memory_space<vmem>>, vector<8x128xf32>,
    return
  }
  func.func @transform_0(%arg0: i32) -> (i32, i32) {
    %c0_i32 = arith.constant 0 : i32
    %c0_i32_0 = arith.constant 0 : i32
    return %arg0, %c0_i32 : i32, i32
  }
  func.func @transform_1(%arg0: i32) -> (i32, i32) {
    %c0_i32 = arith.constant 0 : i32
    %c0_i32_0 = arith.constant 0 : i32
    %c0_i32_1 = arith.constant 0 : i32
    return %c0_i32, %c0_i32_0 : i32, i32
  }
  func.func @transform_2(%arg0: i32) -> i32 {
    %c0_i32 = arith.constant 0 : i32
    %c0_i32_0 = arith.constant 0 : i32
    return %c0_i32 : i32
  }
  func.func @transform_3(%arg0: i32) -> (i32, i32) {
    %c0_i32 = arith.constant 0 : i32
    %c0_i32_0 = arith.constant 0 : i32
    return %arg0, %c0_i32 : i32, i32
  }
}

</mosaic_0001>

<bundles_post_ra>
// kernel: tpu_custom_call.1
= control target key start
LH: loop header
LB: loop body
LE: loop exit
PB: predicated region body
PF: predicated region fallthrough
CT: control target
= control target key end

     0   :  { %8 = vsyncpa [#allocation3], 0  ;;  %s787_s0 = inlined_call_operand.hbm [shape: f32[16,128], index: 0, kind: input, shape index: {}]   ;;  %s788_s1 = inlined_call_operand.hbm [shape: f32[3,128], index: 1, kind: input, shape index: {}]   ;;  %s789_s2 = inlined_call_operand.vmem [shape: f32[2], index: 2, kind: input, shape index: {}]   ;;  %s790_s3 = inlined_call_operand.hbm [shape: f32[16,128], index: 3, kind: output, shape index: {}]  }
   0x1   :  { %10 = vsyncpa [#allocation3 + $0x1], 0 }
   0x2   :  { %11 = vsyncpa [#allocation7], 0 }
   0x3   :  { %12 = vsyncpa [#allocation5], 0 }
   0x4   :  { %13 = vsyncpa [#allocation4], 0 }
   0x5   :  { %15 = vsyncpa [#allocation4 + $0x1], 0  ;;  %s638_s12 = smov 0   ;;  %s640_s13 = smov 0  }
   0x6   :  { %s642_s14 = smov 0   ;;  %s644_s15 = smov 0  }
   0x7 LB: > { %s659_s16 = sadd.s32 4294967295, %s614_s15   ;;  %s373_s17 = sadd.s32 4294967294, %s614_s15   ;;  %s614_s15 = sphi %s644_s15, %s800_s15   ;;  %s610_s14 = sphi %s642_s14, %s799_s14   ;;  %s606_s13 = sphi %s640_s13, %s798_s13   ;;  %s602_s12 = sphi %s638_s12, %s797_s12  }
   0x8   : > { %p41_p0 = scmp.ne.s32.totalorder %s606_s13, %s602_s12  ;;  %p42_p1 = scmp.eq.s32.totalorder %s659_s16, 0 }
   0x9   : > { %p107_p2 = scmp.eq.s32.totalorder %s659_s16, 1  ;;  %p113_p3 = scmp.eq.s32.totalorder %s373_s17, 1 }
   0xa   : > { %p668_p4 = por %p42_p1, %p41_p0  ;;  %p374_p5 = scmp.ge.s32.totalorder %s614_s15, 1 }
   0xb   : > { %p673_p6 = por %p113_p3, %p41_p0  ;;  %p120_p7 = scmp.lt.s32.totalorder %s614_s15, 3 }
   0xc   : > { %s132_s22 = sshll.u32 %s788_s1, 4  ;;  %s616_s24 = smov [#allocation6]   ;;  %s133_s22 = int_to_ptr.hbm [resolvable:$true] %s132_s22 }
   0xd   : > { %p681_p8 = pnand %p374_p5, %p120_p7  ;;  %s134_s25 = sshll.u32 %s616_s24, 4  ;;  %s135_s25 = int_to_ptr.vmem [resolvable:$true] %s134_s25 }
   0xe   : > { %s144_s28 = sshll.u32 %s789_s2, 4  ;;  %s617_s29 = smov [#allocation8]   ;;  %s145_s28 = int_to_ptr.vmem [resolvable:$true] %s144_s28 }
   0xf   : > { %p403_p10 = pneg %p681_p8  ;;  %s694_s30 = sadd.s32 1, %s614_s15  }
  0x10   : > { %s28_s4 = sadd.s32 1, %s610_s14  ;;  %s25_s5 = ssub.s32 %s614_s15, %s694_s30 }
  0x11   : > { %p404_p11 = pnand %p403_p10, %p42_p1  ;;  %p35_p12 = scmp.ne.s32.totalorder %s610_s14, %s606_s13 }
  0x12   : > { %p26_p13 = scmp.eq.s32.totalorder %s25_s5, 0  ;;  %p36_p0 = scmp.eq.s32.totalorder %s614_s15, 0 }
  0x13   : > { %406 = dma.hbm_to_vmem [thread:$0]  (!%p404_p11), %s133_s22, 64, %s135_s25, [#allocation7]  }
  0x14   : > { %409 = dma.vmem_to_smem (!%p404_p11), %s145_s28, 16, %s617_s29, [#allocation5]  }
  0x15   : > { %p704_p3 = por %p107_p2, %p35_p12  ;;  %p420_p5 = scmp.lt.s32.totalorder %s614_s15, 2 }
  0x16   : > { %s710_s7 = scalar_select %p26_p13, %s610_s14, %s28_s4  }
  0x17   : > { %p37_p7 = por %p36_p0, %p35_p12  ;;  %s155_s8 = sand.u32 1, %s610_s14  }
  0x18   : > { %s378_s9 = sshll.u32 %s155_s8, 3  ;;  %s379_s10 = sshll.u32 %s614_s15, 3 }
  0x19   : > { %s163_s20 = scalar_lea.hbm %s787_s0, %s379_s10  ;;  %s159_s21 = scalar_lea.vmem [#allocation2], %s378_s9 }
  0x1a   : > { %s167_s22 = sshll.u32 %s159_s21, 4  ;;  %s165_s24 = sshll.u32 %s163_s20, 4  ;;  %s168_s22 = int_to_ptr.vmem [resolvable:$true] %s167_s22  ;;  %s166_s24 = int_to_ptr.hbm [resolvable:$true] %s165_s24 }
  0x1b   : > { %p717_p2 = pnand %p420_p5, %p37_p7  ;;  %s156_s26 = scalar_lea.sflag [#allocation3], %s155_s8 }
  0x1c   : > { %s510_s27 = sshra.s32 %s166_s24, 4  ;;  %s517_s5 = scalar_lea.hbm %s787_s0, 16  ;;  %s511_s27 = int_to_ptr.hbm [resolvable:$true] %s510_s27 }
  0x1d   : > { %s512_s28 = scalar_lea.hbm %s511_s27, 8  ;;  %p514_p11 = pneg %p717_p2 }
  0x1e   : > { %p513_p10 = scmp.ne.s32.totalorder %s511_s27, %s512_s28  ;;  %p518_p0 = scmp.lt.s32.totalorder %s511_s27, %s787_s0 }
  0x1f   : > { %p519_p5 = scmp.lt.s32.totalorder %s517_s5, %s512_s28 }
  0x20   : > { %p515_p12 = pnand %p514_p11, %p513_p10 }
  0x21   : > { %p520_p7 = por %p519_p5, %p518_p0 }
  0x22   : > { %p516_p13 = pneg %p515_p12 }
  0x24   : > { %p521_p9 = pnand %p520_p7, %p516_p13 }
  0x26   : > { %524 = shalt.err (!%p521_p9)
}
  0x27   : > { %413 = dma.hbm_to_vmem [thread:$0]  (!%p717_p2), %s166_s24, 128, %s168_s22, %s156_s26  }
  0x28   : > { %176 = sbr.rel (%p681_p8) target bundleno = 237 (0xed), region = 32  ;;  %s734_s8 = sand.u32 (!%p681_p8), 1, %s606_s13  }
  0x29   : > { %s381_s11 = sshll.u32 (!%p681_p8), %s734_s8, 3  ;;  %s179_s17 = scalar_lea.sflag (!%p681_p8), [#allocation3], %s734_s8 }
  0x2a   : > { %s182_s20 = scalar_lea.vmem (!%p681_p8), [#allocation2], %s381_s11 }
  0x2d   : > { %585 = dma.done.wait (%p668_p4), %s179_s17, 128  }
  0x2e   : > { %587 = vsyncadd (%p668_p4), %s179_s17, 4294967168 }
  0x2f   : > { %589 = dma.done.wait (%p42_p1), [#allocation7], 64  }
  0x30   : > { %591 = vsyncadd (%p42_p1), [#allocation7], 4294967232 }
  0x31   : > { %593 = dma.done.wait (%p42_p1), [#allocation5], 16  }
  0x32   : > { %595 = vsyncadd (%p42_p1), [#allocation5], 4294967280 }
  0x33   : > { %198 = sfence }
  0x34   : > { %v217_v0 = vld [vmem:[%s182_s20] sm:$0xff]  ;;  %v458_v17 = vld [vmem:[#allocation6] ss:$0 sm:$0xff]  ;;  %v459_v19 = vld [vmem:[#allocation6 + $0x1] ss:$0 sm:$0xff]  ;;  %s255_s18 = sld [smem:[#allocation8]] }
  0x35   : > { %221 = vadd.xlane.f32.xlu0 %v217_v0  ;;  %v223_v1 = vmul.f32 %v217_v0, %v217_v0  ;;  %v460_v23 = vld [vmem:[#allocation6 + $0x2] ss:$0 sm:$0xff]  ;;  %s385_s23 = sld [smem:[#allocation8 + $0x1]]  ;;  %s388_s21 = sshll.u32 %s659_s16, 3 }
  0x36   : > { %s276_s25 = scalar_lea.hbm %s790_s3, %s388_s21  ;;  %s216_s26 = scalar_lea.vmem [#allocation9], %s381_s11 }
  0x37   : > { %s278_s27 = sshll.u32 %s216_s26, 4  ;;  %s280_s28 = sshll.u32 %s276_s25, 4  ;;  %s279_s27 = int_to_ptr.vmem [resolvable:$true] %s278_s27  ;;  %s281_s28 = int_to_ptr.hbm [resolvable:$true] %s280_s28 }
  0x38   : > { %s266_s29 = scalar_lea.sflag [#allocation4], %s734_s8  ;;  %s554_s16 = sshra.s32 %s281_s28, 4  ;;  %s555_s16 = int_to_ptr.hbm [resolvable:$true] %s554_s16 }
  0x39   : > { %s556_s4 = scalar_lea.hbm %s555_s16, 8  ;;  %s560_s10 = scalar_lea.hbm %s790_s3, 16 }
  0x3a   : > { %v257_v29 = vstv %s255_s18  ;;  %p557_p1 = scmp.ne.s32.totalorder %s555_s16, %s556_s4  ;;  %p561_p9 = scmp.lt.s32.totalorder %s555_s16, %s790_s3 }
  0x3b   : > { %v259_v31 = vstv %s385_s23  ;;  %p562_p2 = scmp.lt.s32.totalorder %s560_s10, %s556_s4 }
  0x3c   : > { %p558_p4 = pnand %p557_p1, %p704_p3 }
  0x3d   : > { %224 = vadd.xlane.f32.xlu0 %v223_v1  ;;  %p563_p10 = por %p562_p2, %p561_p9 }
  0x3e   : > { %p559_p8 = pneg %p558_p4 }
  0x40   : > { %p564_p11 = pnand %p563_p10, %p559_p8 }
  0xa8   : > { %v222_v2 = vpop.xlane.xlu0 %221 }
  0xa9   : > { %v226_v3 = vmul.f32 0.03125, %v222_v2 }
  0xab   : > { %v228_v5 = vmul.f32 %v226_v3, %v226_v3  ;;  %v242_v16 = vsub.f32 %v217_v0, %v226_v3 }
  0xb0   : > { %v225_v4 = vpop.xlane.xlu0 %224 }
  0xb1   : > { %v227_v6 = vmul.f32 0.03125, %v225_v4 }
  0xb3   : > { %v229_v7 = vsub.f32 %v227_v6, %v228_v5 }
  0xb5   : > { %v230_v8 = vmax.f32 %v229_v7, 0.0 }
  0xb7   : > { %v231_v9 = vadd.f32 1e-05, %v230_v8 }
  0xb9   : > { %461 = vrsqrt.f32 %v231_v9  ;;  %vm238_vm1 = vweird.f32 %v231_v9 }
  0xbf   : > { %v462_v10 = vpop.eup %461 }
  0xc0   : > { %v233_v11 = vmul.f32 %v462_v10, %v231_v9  ;;  %vm239_vm0 = vweird.f32 %v462_v10 }
  0xc1   : > { %vm240_vm2 = vmor %vm238_vm1, %vm239_vm0 }
  0xc2   : > { %v234_v12 = vmul.f32 %v462_v10, %v233_v11 }
  0xc4   : > { %v235_v13 = vmul.f32 0.5, %v234_v12 }
  0xc6   : > { %v236_v14 = vsub.f32 1.5, %v235_v13 }
  0xc8   : > { %v237_v15 = vmul.f32 %v462_v10, %v236_v14 }
  0xca   : > { %v241_v18 = vsel %vm240_vm2, %v462_v10, %v237_v15 }
  0xcb   : > { %v243_v20 = vmul.f32 %v242_v16, %v241_v18 }
  0xcd   : > { %v245_v21 = vmul.f32 %v458_v17, %v243_v20 }
  0xcf   : > { %v247_v22 = vadd.f32 %v459_v19, %v245_v21 }
  0xd1   : > { %v248_v24 = vand.u32 2147483647, %v247_v22 }
  0xd3   : > { %v250_v25 = vsub.f32 %v248_v24, %v460_v23 }
  0xd5   : > { %v251_v26 = vmul.f32 0.5, %v250_v25 }
  0xd7   : > { %463 = vtanh.f32 %v251_v26 }
  0xdd   : > { %v464_v27 = vpop.eup %463 }
  0xde   : > { %v253_v28 = vmul.f32 0.5, %v464_v27 }
  0xe0   : > { %v254_v30 = vadd.f32 0.5, %v253_v28 }
  0xe2   : > { %v258_v32 = vmul.f32 %v257_v29, %v254_v30 }
  0xe4   : > { %v260_v33 = vadd.f32 %v259_v31, %v258_v32 }
  0xe6   : > { %v261_v34 = vmul.f32 %v260_v33, %v217_v0 }
  0xe8   : > { %v386_v35 = vclamps-f32 %v261_v34, 100.0 }
  0xea   : > { %264 = vst [vmem:[%s216_s26] sm:$0xff] %v386_v35 }
  0xeb   : > { %567 = shalt.err (!%p564_p11)
}
  0xec   : > { %401 = dma.vmem_to_hbm [thread:$0]  (%p704_p3), %s279_s27, 128, %s281_s28, %s266_s29  }
  0xed PF: > { %s292_s8 = sand.u32 1, %s602_s12   ;;  %p796_p12 = scmp.ge.s32.totalorder %s614_s15, 2 }
  0xee   : > { %s293_s20 = scalar_lea.sflag [#allocation4], %s292_s8 }
  0xef   : > { %p415_p13 = pnand %p796_p12, %p673_p6 }
  0xf1   : > { %p416_p0 = pneg %p415_p13 }
  0xf3   : > { %597 = dma.done.wait (%p416_p0), %s293_s20, 128  }
  0xf4   : > { %599 = vsyncadd (%p416_p0), %s293_s20, 4294967168  ;;  %p18_p5 = scmp.ge.s32.totalorder %s694_s30, 4   ;;  %s797_s12 = smov %s606_s13 }
  0xf5   : > { %s798_s13 = smov %s610_s14  ;;  %s799_s14 = smov %s710_s7 }
  0xf6   : > { %s800_s15 = smov %s694_s30  ;;  %20 = sbr.rel (!%p18_p5) target bundleno = 7 (0x7), region = 86 }
  0xfb   :  { %299 = vsyncpa [#allocation3], 1 }
  0xfc   :  { %301 = vsyncpa [#allocation3 + $0x1], 1 }
  0xfd   :  { %302 = vsyncpa [#allocation7], 1 }
  0xfe   :  { %303 = vsyncpa [#allocation4], 1 }
  0xff   :  { %305 = vsyncpa [#allocation4 + $0x1], 1 }
 0x100   :  { %306 = vsyncpa [#allocation5], 1 }
 0x101   :  { %308 = vsyncpa [#allocation5 + $0x1], 1 }

</bundles_post_ra>
